<compile_context>
chip_gen: v7x
topology: tpu7x:2x2x1
jax: 0.10.0
libtpu: 0.0.40
codegen_flags: <defaults>
</compile_context>

<pallas_src>
import functools

import jax
import jax.numpy as jnp
from jax import lax
from jax.experimental import pallas as pl
from jax.experimental.pallas import tpu as pltpu


def _linear_kernel(x_ref, w_ref, b_ref, o_ref, *, precision=None):
    # x_ref: (tm, H) activations
    # w_ref: (tn, H) weight tile in native [vocab, hidden] layout (never transposed)
    # b_ref: (1, tn) fp32 bias tile
    # o_ref: (tm, tn) lane-dense output tile
    acc = lax.dot_general(
        x_ref[...], w_ref[...],
        dimension_numbers=(((1,), (1,)), ((), ())),   # contract the shared hidden axis
        preferred_element_type=jnp.float32,           # fp32 MXU accumulation
        precision=precision,
    )
    o_ref[...] = (acc + b_ref[...]).astype(o_ref.dtype)


def _round_up(a, m):
    return ((a + m - 1) // m) * m


def _tpu_generation():
    """Best-effort (vmem_capacity_bytes, is_v7x, is_v5e) with safe fallbacks."""
    vmem = 128 * 1024 * 1024
    kind = ""
    try:
        info = pltpu.get_tpu_info()
        vmem = int(getattr(info, "vmem_capacity_bytes", vmem)) or vmem
    except Exception:
        pass
    try:
        kind = jax.devices()[0].device_kind.lower()
    except Exception:
        pass
    is_v7x = (vmem <= 64 * 1024 * 1024) or ("v7" in kind)
    is_v5e = (("v5e" in kind) or ("v5 lite" in kind) or ("v5litepod" in kind)) and not is_v7x
    return vmem, is_v7x, is_v5e


def top_layer_forward(x, weight, bias, *, compute_dtype=jnp.bfloat16,
                      out_dtype=None, precision=None):
    """nn.Linear forward: y = x @ weight.T + bias.

    x:      [..., hidden]
    weight: [vocab, hidden]  (native PyTorch nn.Linear layout; never transposed)
    bias:   [vocab]
    compute_dtype: MXU operand dtype. Default bf16 (MXU-native) with fp32 accumulation.
    out_dtype:     logits dtype (default x.dtype); pass bf16 to halve writeback traffic.
    precision:     forwarded to lax.dot_general (lax.Precision.HIGHEST for bit-accurate
                   fp32 at significant MXU cost).
    """
    orig_shape = x.shape
    hidden = orig_shape[-1]
    vocab = weight.shape[0]
    if out_dtype is None:
        out_dtype = x.dtype
    if compute_dtype is None:
        compute_dtype = x.dtype

    x2d = x.reshape(-1, hidden)
    M = x2d.shape[0]

    itemsize = jnp.dtype(compute_dtype).itemsize
    out_itemsize = jnp.dtype(out_dtype).itemsize

    # ---- generation-aware VMEM budget ----
    vmem_cap, is_v7x, is_v5e = _tpu_generation()
    vmem_limit = min(int(vmem_cap * 0.85), vmem_cap - 12 * 1024 * 1024)
    budget = int(vmem_limit * 0.80)          # headroom for internal scratch
    w_bufs = 1 if is_v7x else 2              # weight single-buffered on v7x
    # v5e roofline crossover ~240 flops/byte -> tn=512 already saturates its MXU;
    # v6e/v7x crossovers are ~620-675 flops/byte -> aim for tn >= 1024.
    tn_cap = 512 if is_v5e else 1024

    # ---- tile selection ----
    V128 = _round_up(vocab, 128)
    tn = min(tn_cap, V128)

    # Single M tile for small/medium batches: x and W each stream from HBM once.
    tm = _round_up(max(M, 16), 16)
    if tm > 1024:
        tm = 256 if is_v7x else 512

    def footprint(tm_, tn_):
        return (2 * tm_ * hidden * itemsize          # activation tile (double-buffered)
                + w_bufs * tn_ * hidden * itemsize   # weight tile
                + 2 * tn_ * 4                        # fp32 bias tile
                + 2 * tm_ * tn_ * out_itemsize)      # output tile

    while footprint(tm, tn) > budget and tn > 128:
        tn = max((tn // 2) // 128 * 128, 128)
    while footprint(tm, tn) > budget and tm > 16:
        tm = max((tm // 2) // 16 * 16, 16)
    # TODO(synk): only K-tile the hidden axis (extra "arbitrary" grid axis + fp32 VMEM
    # accumulator with pl.when init/finalize) if hidden >= ~16-32K makes even tn=1024
    # impossible; naive (j,i,k) ordering re-streams the weight M/tm times, so tm/tn
    # must then also grow (~1.5K each) to stay compute-bound.

    # Prefer a tn that divides the 128-aligned vocab so no weight pad copy is
    # materialized, unless that costs more than half the tile width.
    if V128 % tn != 0:
        cand = (tn // 128) * 128
        best = 128
        while cand >= 128:
            if V128 % cand == 0:
                best = cand
                break
            cand -= 128
        if best >= tn // 2:
            tn = best
    V_pad = _round_up(V128, tn)
    M_pad = _round_up(M, tm)

    # ---- operand prep: copy only when dtype / shape actually changes ----
    if x2d.dtype != compute_dtype:
        x2d = x2d.astype(compute_dtype)
    if M_pad != M:
        x2d = jnp.pad(x2d, ((0, M_pad - M), (0, 0)))

    # TODO(synk): for a real LM head, pre-cast the weight to compute_dtype once at
    # init (outside this per-call wrapper) so the astype below never runs per call.
    w = weight if weight.dtype == compute_dtype else weight.astype(compute_dtype)
    b = bias if bias.dtype == jnp.float32 else bias.astype(jnp.float32)
    b = b.reshape(1, vocab)
    if V_pad != vocab:
        w = jnp.pad(w, ((0, V_pad - vocab), (0, 0)))
        b = jnp.pad(b, ((0, 0), (0, V_pad - vocab)))

    # Weight-resident ordering: vocab tiles OUTER, M tiles inner. The weight block
    # index (j, 0) is constant across the inner M loop, so each (tn, H) weight tile
    # is DMA'd from HBM exactly once per chip; only the small x tile is re-fetched.
    grid = (V_pad // tn, M_pad // tm)

    w_spec_kwargs = {}
    if is_v7x:
        # Weight block index changes only once per inner-M sweep -> its 2nd pipeline
        # buffer is dead VMEM on 64 MiB v7x; single-buffer it to free tn*H*itemsize.
        w_spec_kwargs = dict(pipeline_mode=pl.Buffered(1))
        # TODO(synk): bump the activation spec to pl.Buffered(3) if xprof shows
        # exposed DMA at inner-step boundaries on v7x.

    in_specs = [
        pl.BlockSpec((tm, hidden), lambda j, i: (i, 0)),                    # activations
        pl.BlockSpec((tn, hidden), lambda j, i: (j, 0), **w_spec_kwargs),   # weight (native layout)
        pl.BlockSpec((1, tn), lambda j, i: (0, j)),                         # fp32 bias
    ]

    cost = pl.CostEstimate(
        flops=2 * M_pad * hidden * V_pad,
        transcendentals=0,
        bytes_accessed=int(
            M_pad * hidden * itemsize * (V_pad // tn)     # x re-read once per vocab tile
            + V_pad * hidden * itemsize                   # weight streamed once
            + V_pad * 4 * (M_pad // tm)                   # bias re-read per M tile
            + M_pad * V_pad * out_itemsize                # logits writeback
        ),
    )

    out = pl.pallas_call(
        functools.partial(_linear_kernel, precision=precision),
        out_shape=jax.ShapeDtypeStruct((M_pad, V_pad), out_dtype),
        grid_spec=pltpu.PrefetchScalarGridSpec(
            num_scalar_prefetch=0,
            grid=grid,
            in_specs=in_specs,
            out_specs=pl.BlockSpec((tm, tn), lambda j, i: (i, j)),
        ),
        compiler_params=pltpu.CompilerParams(
            # Megacore split pinned to the vocab axis (axis 0): each TC streams the
            # weight exactly once; inner M axis runs in-order on a single core.
            dimension_semantics=("parallel", "arbitrary"),
            vmem_limit_bytes=vmem_limit,
        ),
        cost_estimate=cost,
    )(x2d, w, b)

    if M_pad != M or V_pad != vocab:
        out = out[:M, :vocab]
    # TODO(synk): to cut logits write traffic further, fuse the downstream
    # softmax / cross-entropy / top-k reduction into the kernel via @pl.when on
    # the last vocab step instead of materializing full-precision logits in HBM.
    return out.reshape(*orig_shape[:-1], vocab)


if __name__ == "__main__":
    batch, seq, hidden, vocab = 2, 8, 32, 128

    key = jax.random.PRNGKey(0)
    kx, kw, kb = jax.random.split(key, 3)

    x = jax.random.normal(kx, (batch, seq, hidden), dtype=jnp.float32)
    # PyTorch nn.Linear parameter shapes: W [vocab, hidden], b [vocab]
    weight = jax.random.normal(kw, (vocab, hidden), dtype=jnp.float32) * 0.02
    bias = jax.random.normal(kb, (vocab,), dtype=jnp.float32) * 0.02

    y_ref = x @ weight.T + bias

    # Default path: bf16 operands, fp32 MXU accumulation (MXU-native) -> loose tol.
    y = jax.block_until_ready(top_layer_forward(x, weight, bias))
    assert y.shape == (batch, seq, vocab)
    assert jnp.allclose(y, y_ref, atol=2e-2, rtol=2e-2)

    # fp32-operand path (nn.Linear forward semantics at default TPU matmul precision).
    y_f32 = jax.block_until_ready(
        top_layer_forward(x, weight, bias, compute_dtype=jnp.float32))
    assert y_f32.shape == (batch, seq, vocab)
    assert jnp.allclose(y_f32, y_ref, atol=1e-5, rtol=1e-5)

    print("KERNEL_OK")
</pallas_src>

<mosaic_0001>
module attributes {stable_mosaic.version = 11 : i64} {
  func.func @_linear_kernel(%arg0: i32, %arg1: i32, %arg2: memref<16x32xbf16, #tpu.memory_space<vmem>>, %arg3: memref<128x32xbf16, #tpu.memory_space<vmem>>, %arg4: memref<1x128xf32, #tpu.memory_space<vmem>>, %arg5: memref<16x128xf32, #tpu.memory_space<vmem>>) attributes {dimension_semantics = [#tpu.dimension_semantics<parallel>, #tpu.dimension_semantics<arbitrary>], iteration_bounds = array<i64: 1, 1>, scalar_prefetch = 0 : i64, scratch_operands = 0 : i64, tpu.core_type = #tpu.core_type<tc>, window_params = [{transform_indices = @transform_0, window_bounds = array<i64: 16, 32>}, {transform_indices = @transform_1, window_bounds = array<i64: 128, 32>}, {transform_indices = @transform_2, window_bounds = array<i64: 1, 128>}, {transform_indices = @transform_3, window_bounds = array<i64: 16, 128>}]} {
    %c0 = arith.constant 0 : index
    %c0_0 = arith.constant 0 : index
    %0 = vector.load %arg2[%c0, %c0_0] : memref<16x32xbf16, #tpu.memory_space<vmem>>, vector<16x32xbf16>
    %c0_1 = arith.constant 0 : index
    %c0_2 = arith.constant 0 : index
    %1 = vector.load %arg3[%c0_1, %c0_2] : memref<128x32xbf16, #tpu.memory_space<vmem>>, vector<128x32xbf16>
    %cst = arith.constant dense<0.000000e+00> : vector<16x128xf32>
    %2 = tpu.matmul %0, %1, %cst {dimension_numbers = #tpu.dot_dimension_numbers<[1], [1], [0], [0], [0, 0, 1, 0], [], []>} : vector<16x32xbf16>, vector<128x32xbf16>, vector<16x128xf32> -> vector<16x128xf32>
    %c0_3 = arith.constant 0 : index
    %c0_4 = arith.constant 0 : index
    %3 = vector.load %arg4[%c0_3, %c0_4] : memref<1x128xf32, #tpu.memory_space<vmem>>, vector<1x128xf32>
    %4 = vector.broadcast %3 : vector<1x128xf32> to vector<16x128xf32>
    %5 = arith.addf %2, %4 : vector<16x128xf32>
    %c0_5 = arith.constant 0 : index
    %c0_6 = arith.constant 0 : index
    %6 = vector.load %arg5[%c0_5, %c0_6] : memref<16x128xf32, #tpu.memory_space<vmem>>, vector<16x128xf32>
    tpu.vector_store %arg5[%c0_5, %c0_6], %5 {strides = array<i32>} : memref<16x128xf32, #tpu.memory_space<vmem>>, vector<16x128xf32>,
    return
  }
  func.func @transform_0(%arg0: i32, %arg1: i32) -> (i32, i32) {
    %c0_i32 = arith.constant 0 : i32
    %c0_i32_0 = arith.constant 0 : i32
    return %arg1, %c0_i32 : i32, i32
  }
  func.func @transform_1(%arg0: i32, %arg1: i32) -> (i32, i32) {
    %c0_i32 = arith.constant 0 : i32
    %c0_i32_0 = arith.constant 0 : i32
    return %arg0, %c0_i32 : i32, i32
  }
  func.func @transform_2(%arg0: i32, %arg1: i32) -> (i32, i32) {
    %c0_i32 = arith.constant 0 : i32
    %c0_i32_0 = arith.constant 0 : i32
    return %c0_i32, %arg0 : i32, i32
  }
  func.func @transform_3(%arg0: i32, %arg1: i32) -> (i32, i32) {
    %c0_i32 = arith.constant 0 : i32
    return %arg1, %arg0 : i32, i32
  }
}

</mosaic_0001>

<bundles_post_ra>
// kernel: tpu_custom_call.1
= control target key start
LH: loop header
LB: loop body
LE: loop exit
PB: predicated region body
PF: predicated region fallthrough
CT: control target
= control target key end

     0   :  { %8 = vsyncpa [#allocation3], 0  ;;  %s461_s0 = inlined_call_operand.hbm [shape: bf16[16,32], index: 0, kind: input, shape index: {}]   ;;  %s462_s1 = inlined_call_operand.hbm [shape: bf16[128,32], index: 1, kind: input, shape index: {}]   ;;  %s463_s2 = inlined_call_operand.hbm [shape: f32[1,128], index: 2, kind: input, shape index: {}]   ;;  %s464_s3 = inlined_call_operand.hbm [shape: f32[16,128], index: 3, kind: output, shape index: {}]  }
   0x1   :  { %9 = vsyncpa [#allocation6], 0 }
   0x2   :  { %10 = vsyncpa [#allocation4], 0  ;;  %s367_s12 = smov [#allocation5]   ;;  %s368_s14 = smov [#allocation2]  }
   0x3   :  { %s28_s13 = sshll.u32 %s367_s12, 4  ;;  %s16_s15 = sshll.u32 %s368_s14, 4  ;;  %s29_s13 = int_to_ptr.vmem [resolvable:$true] %s28_s13  ;;  %s397_s15 = int_to_ptr.vmem [resolvable:$true] %s16_s15 }
   0x4   :  { %s273_s18 = scalar_lea.hbm %s462_s1, 1024 }
   0x5   :  { %p274_p0 = scmp.ne.s32.totalorder %s462_s1, %s273_s18  ;;  %p277_p1 = scmp.lt.u32.totalorder %s273_s18, %s462_s1 }
   0x7   :  { %p279_p2 = pnand %p277_p1, %p274_p0 }
   0x9   :  { %282 = shalt.err (!%p279_p2)
}
   0xa   :  { %s283_s23 = scalar_lea.vmem %s29_s13, 1024  ;;  %p288_p4 = scmp.lt.s32.totalorder %s29_s13, %s29_s13 }
   0xb   :  { %p284_p3 = scmp.ne.s32.totalorder %s29_s13, %s283_s23  ;;  %p289_p5 = scmp.lt.s32.totalorder %s283_s23, %s283_s23 }
   0xd   :  { %p290_p6 = por %p289_p5, %p288_p4 }
   0xf   :  { %p291_p7 = pnand %p290_p6, %p284_p3 }
  0x11   :  { %294 = shalt.err (!%p291_p7)
}
  0x12   :  { %s369_s24 = smov 64   ;;  %s370_s25 = smov 4  }
  0x13   :  { %34 = dma.hbm_to_vmem [thread:$0]  %s462_s1, 1024, %s29_s13, [#allocation6], %s369_s24, %s369_s24, %s370_s25  }
  0x14   :  { %s295_s30 = scalar_lea.hbm %s461_s0, 128 }
  0x15   :  { %p296_p8 = scmp.ne.s32.totalorder %s461_s0, %s295_s30  ;;  %p299_p9 = scmp.lt.u32.totalorder %s295_s30, %s461_s0 }
  0x17   :  { %p301_p10 = pnand %p299_p9, %p296_p8 }
  0x19   :  { %304 = shalt.err (!%p301_p10)
}
  0x1a   :  { %s305_s8 = scalar_lea.vmem %s397_s15, 128  ;;  %p310_p12 = scmp.lt.s32.totalorder %s397_s15, %s397_s15 }
  0x1b   :  { %p306_p11 = scmp.ne.s32.totalorder %s397_s15, %s305_s8  ;;  %p311_p13 = scmp.lt.s32.totalorder %s305_s8, %s305_s8 }
  0x1d   :  { %p312_p0 = por %p311_p13, %p310_p12 }
  0x1f   :  { %p313_p1 = pnand %p312_p0, %p306_p11 }
  0x21   :  { %316 = shalt.err (!%p313_p1)
}
  0x22   :  { %22 = dma.hbm_to_vmem [thread:$0]  %s461_s0, 128, %s397_s15, [#allocation3], %s369_s24, %s369_s24, %s370_s25  }
  0x23   :  { %s371_s10 = smov [#allocation7]   ;;  %s317_s14 = scalar_lea.hbm %s463_s2, 16 }
  0x24   :  { %s41_s11 = sshll.u32 %s371_s10, 4  ;;  %p318_p2 = scmp.ne.s32.totalorder %s463_s2, %s317_s14  ;;  %s42_s11 = int_to_ptr.vmem [resolvable:$true] %s41_s11 }
  0x25   :  { %p321_p3 = scmp.lt.u32.totalorder %s317_s14, %s463_s2 }
  0x27   :  { %p323_p4 = pnand %p321_p3, %p318_p2 }
  0x29   :  { %326 = shalt.err (!%p323_p4)
}
  0x2a   :  { %s327_s20 = scalar_lea.vmem %s42_s11, 16  ;;  %s331_s0 = scalar_lea.vmem %s42_s11, 32 }
  0x2b   :  { %p328_p5 = scmp.ne.s32.totalorder %s42_s11, %s327_s20  ;;  %p332_p6 = scmp.lt.s32.totalorder %s42_s11, %s42_s11 }
  0x2c   :  { %p333_p7 = scmp.lt.s32.totalorder %s331_s0, %s327_s20 }
  0x2e   :  { %p334_p8 = por %p333_p7, %p332_p6 }
  0x30   :  { %p335_p9 = pnand %p334_p8, %p328_p5 }
  0x32   :  { %338 = shalt.err (!%p335_p9)
}
  0x33   :  { %44 = dma.hbm_to_vmem [thread:$0]  %s463_s2, 16, %s42_s11, [#allocation6]  }
  0x34   :  { %361 = dma.done.wait [#allocation3], 128  }
  0x35   :  { %362 = vsyncadd [#allocation3], 4294967168 }
  0x36   :  { %363 = dma.done.wait [#allocation6], 1040  }
  0x37   :  { %364 = vsyncadd [#allocation6], 4294966256  ;;  %v372_v0 = vmov 0.0   ;;  %vm373_vm0 = vmmov 0   ;;  %vm125_vm1 = vcmask 261120   ;;  %v264_v1 = vld [vmem:[#allocation5] sm:$0xff]  }
  0x38   :  { %234 = vmatprep.subr.bf16.mxu0 %v372_v0  ;;  %250 = vmatprep.mubr.msk.bf16.mxu0 %vm373_vm0, %v372_v0  ;;  %v130_v2 = vsel %vm125_vm1, %v264_v1, 0  ;;  %v265_v3 = vld [vmem:[#allocation5 + $0x8] sm:$0xff]   ;;  %v266_v5 = vld [vmem:[#allocation5 + $0x10] sm:$0xff]   ;;  %v267_v7 = vld [vmem:[#allocation5 + $0x18] sm:$0xff]   ;;  %s374_s2 = smov [#allocation8]  }
  0x39   :  { %235 = vmatpush3.bf16.xpose.msra.mxu0 %v130_v2  ;;  %v133_v4 = vsel %vm125_vm1, %v265_v3, 0  ;;  %v136_v6 = vsel %vm125_vm1, %v266_v5, 0  ;;  %v139_v8 = vsel %vm125_vm1, %v267_v7, 0  ;;  %v268_v9 = vld [vmem:[#allocation5 + $0x20] sm:$0xff]   ;;  %v269_v11 = vld [vmem:[#allocation5 + $0x28] sm:$0xff]   ;;  %v270_v13 = vld [vmem:[#allocation5 + $0x30] sm:$0xff]  }
  0x3a   :  { %236 = vmatprep.subr.bf16.mxu0 %v372_v0  ;;  %v142_v10 = vsel %vm125_vm1, %v268_v9, 0  ;;  %v145_v12 = vsel %vm125_vm1, %v269_v11, 0  ;;  %v148_v14 = vsel %vm125_vm1, %v270_v13, 0  ;;  %v271_v15 = vld [vmem:[#allocation5 + $0x38] sm:$0xff]   ;;  %v214_v18 = vld [vmem:[#allocation7] ss:$0 sm:$0xff] }
  0x3b   :  { %v151_v16 = vsel %vm125_vm1, %v271_v15, 0  ;;  %v272_v17 = vld [vmem:[#allocation2] sm:$0xff]   ;;  %s201_s22 = sshll.u32 %s374_s2, 4  ;;  %s202_s22 = int_to_ptr.vmem [resolvable:$true] %s201_s22 }
  0x3c   :  { %s339_s23 = scalar_lea.vmem %s202_s22, 256  ;;  %p344_p11 = scmp.lt.s32.totalorder %s202_s22, %s202_s22 }
  0x3d   :  { %p340_p10 = scmp.ne.s32.totalorder %s202_s22, %s339_s23  ;;  %p345_p12 = scmp.lt.s32.totalorder %s339_s23, %s339_s23 }
  0x3f   :  { %p346_p13 = por %p345_p12, %p344_p11 }
  0x41   :  { %237 = vmatpush3.bf16.xpose.msra.mxu0 %v133_v4  ;;  %p347_p0 = pnand %p346_p13, %p340_p10 }
  0x42   :  { %238 = vmatprep.subr.bf16.mxu0 %v372_v0 }
  0x49   :  { %239 = vmatpush3.bf16.xpose.msra.mxu0 %v136_v6 }
  0x4a   :  { %240 = vmatprep.subr.bf16.mxu0 %v372_v0 }
  0x51   :  { %241 = vmatpush3.bf16.xpose.msra.mxu0 %v139_v8 }
  0x52   :  { %242 = vmatprep.subr.bf16.mxu0 %v372_v0 }
  0x59   :  { %243 = vmatpush3.bf16.xpose.msra.mxu0 %v142_v10 }
  0x5a   :  { %244 = vmatprep.subr.bf16.mxu0 %v372_v0 }
  0x61   :  { %245 = vmatpush3.bf16.xpose.msra.mxu0 %v145_v12 }
  0x62   :  { %246 = vmatprep.subr.bf16.mxu0 %v372_v0 }
  0x69   :  { %247 = vmatpush3.bf16.xpose.msra.mxu0 %v148_v14 }
  0x6a   :  { %248 = vmatprep.subr.bf16.mxu0 %v372_v0 }
  0x71   :  { %249 = vmatpush3.bf16.xpose.msra.mxu0 %v151_v16 }
  0x78   :  { %251 = vmatmul.mubr.msk.bf16.vlgmr.msra.gmra.mrb[0].mxu0 %vm125_vm1, %v272_v17 }
 0x14b   :  { %v187_v19 = vpop.f32.mrb[0].mxu0 }
 0x14c   :  { %v188_v20 = vadd.f32 %v214_v18, %v187_v19  ;;  %v252_v21 = vpop.f32.mrb[1].mxu0 }
 0x14d   :  { %v190_v22 = vpop.f32.mrb[2].mxu0 }
 0x14e   :  { %194 = vst [vmem:[#allocation8] sm:$0xff] %v188_v20  ;;  %v191_v23 = vadd.f32 %v214_v18, %v190_v22  ;;  %v253_v24 = vpop.f32.mrb[3].mxu0 }
 0x150   :  { %195 = vst [vmem:[#allocation8 + $0x8] sm:$0xff] %v191_v23 }
 0x151   :  { %350 = shalt.err (!%p347_p0)
}
 0x152   :  { %s351_s26 = scalar_lea.hbm %s464_s3, 256 }
 0x153   :  { %p352_p1 = scmp.ne.s32.totalorder %s464_s3, %s351_s26  ;;  %p355_p2 = scmp.lt.u32.totalorder %s351_s26, %s464_s3 }
 0x155   :  { %p357_p3 = pnand %p355_p2, %p352_p1 }
 0x157   :  { %360 = shalt.err (!%p357_p3)
}
 0x158   :  { %s375_s4 = smov 128   ;;  %s376_s5 = smov 8  }
 0x159   :  { %207 = dma.vmem_to_hbm [thread:$0]  %s202_s22, 256, %s464_s3, [#allocation4], %s375_s4, %s375_s4, %s376_s5  }
 0x15a   :  { %365 = dma.done.wait [#allocation4], 256  }
 0x15b   :  { %366 = vsyncadd [#allocation4], 4294967040 }
 0x15c   :  { %211 = vsyncpa [#allocation3], 1 }
 0x15d   :  { %212 = vsyncpa [#allocation6], 1 }
 0x15e   :  { %213 = vsyncpa [#allocation4], 1 }

</bundles_post_ra>
